<compile_context>
chip_gen: v5e
topology: v5e:2x2
jax: 0.10.0
libtpu: 0.0.40
codegen_flags: <defaults>
</compile_context>

<pallas_src>
import math

import jax
import jax.numpy as jnp
from jax import lax
from jax.experimental import pallas as pl
from jax.experimental.pallas import tpu as pltpu

# ----------------------------- model config (small) -----------------------------
D_MODEL = 32
NUM_HEADS = 4
DEPTH = D_MODEL // NUM_HEADS
DFF = 64
BATCH = 2
SEQ = 8
LN_EPS = 1e-6


# --------------------------------- kernel ----------------------------------------
def _layernorm(x, gamma, beta):
    mu = jnp.mean(x, axis=-1, keepdims=True)
    var = jnp.mean((x - mu) * (x - mu), axis=-1, keepdims=True)
    return (x - mu) * lax.rsqrt(var + LN_EPS) * gamma + beta


def encoder_layer_kernel(
    x_ref,                    # (N, D)        activations, N = B*S (batch folded in)
    bias_ref,                 # (N, N)        block-diag: mask*(-1e9)+adjoin / -1e9 cross-batch
    w_fused_ref, b_fused_ref,  # (D, 2D+H*D), (1, 2D+H*D)   [Wq | Wk | Wv_h@Wo_h ...]
    bo_ref,                   # (1, D)        output-projection bias
    g_ffn_ref, b_ffn_ref,     # (1, D)        FFN-internal layer_norm
    w1_ref, b1_ref,           # (D, DFF), (1, DFF)
    w2_ref, b2_ref,           # (DFF, D), (1, D)
    g2_ref, be2_ref,          # (1, D)        layernorm2
    out_ref,                  # (N, D)        out2, lane-dense slab
    attn_ref,                 # (N, H*N)      per-head attention, lane-concatenated
):
    N, D = x_ref.shape
    H = NUM_HEADS
    E = D // H
    scale = 1.0 / math.sqrt(E)

    x2 = x_ref[...]                                           # (N, D)
    bias = bias_ref[...]                                      # (N, N)

    # ---- one fused lane-dense projection matmul: Q | K | (V @ Wo per head) -------
    fused = (jnp.dot(x2, w_fused_ref[...], preferred_element_type=jnp.float32)
             + b_fused_ref[...])                              # (N, 2D + H*D)
    q = fused[:, 0:D] * scale                                 # (N, D) pre-scaled queries
    k = fused[:, D:2 * D]                                     # (N, D)

    # ---- block-diagonal attention over all B*S rows, heads as static lane slices --
    ctx_proj = None
    attn_parts = []
    for h in range(H):                                        # H = 4, fully static
        q_h = q[:, h * E:(h + 1) * E]                         # (N, E)
        k_h = k[:, h * E:(h + 1) * E]                         # (N, E)
        vo_h = fused[:, 2 * D + h * D: 2 * D + (h + 1) * D]   # (N, D) lane-dense V@Wo

        # q_h @ k_h^T over ALL rows at once; cross-batch pairs get bias -1e9.
        logits = lax.dot_general(q_h, k_h, (((1,), (1,)), ((), ())),
                                 preferred_element_type=jnp.float32) + bias
        logits = logits - jnp.max(logits, axis=-1, keepdims=True)
        ex = jnp.exp(logits)                                  # cross-batch -> exactly 0
        denom = jnp.sum(ex, axis=-1, keepdims=True)
        attn_h = ex / denom                                   # exact softmax (returned)
        attn_parts.append(attn_h)

        part = jnp.dot(attn_h, vo_h, preferred_element_type=jnp.float32)   # (N, D)
        ctx_proj = part if ctx_proj is None else ctx_proj + part

    # single lane-dense (N, H*N) store of the attention weights
    attn_ref[...] = jnp.concatenate(attn_parts, axis=-1).astype(attn_ref.dtype)

    attn_out = ctx_proj + bo_ref[...]                          # (N, D)
    out1 = x2 + attn_out                                       # residual 1

    # ---- FFN + layernorms over all B*S rows at once -------------------------------
    xn = _layernorm(out1, g_ffn_ref[...], b_ffn_ref[...])
    inter = jnp.maximum(
        jnp.dot(xn, w1_ref[...], preferred_element_type=jnp.float32) + b1_ref[...],
        0.0)
    ffn_out = (jnp.dot(inter, w2_ref[...], preferred_element_type=jnp.float32)
               + b2_ref[...] + out1)                           # FFN adds its own residual

    # EncoderLayer: out2 = layernorm2(out1 + ffn_output)  (double residual, as in ref)
    out2 = _layernorm(out1 + ffn_out, g2_ref[...], be2_ref[...])
    out_ref[...] = out2.astype(out_ref.dtype)


# --------------------------------- wrapper ----------------------------------------
@jax.jit
def encoder_layer_forward(x, mask, adjoin_matrix, params):
    """EncoderLayer.forward(x, training=False, mask, adjoin_matrix) -> (out2, attn_weights)."""
    B, S, D = x.shape
    H, E = NUM_HEADS, DEPTH
    N = B * S

    x2 = x.reshape(N, D).astype(jnp.float32)

    # Block-diagonal attention bias over the flattened token axis:
    #   within a batch : mask*(-1e9) + adjoin_matrix   (identical for every head)
    #   across batches : -1e9  (probability underflows to exactly 0)
    in_bias = (mask * (-1e9) + adjoin_matrix).reshape(B, S, S).astype(jnp.float32)
    bias_full = jnp.full((N, N), -1e9, dtype=jnp.float32)
    for b in range(B):
        bias_full = bias_full.at[b * S:(b + 1) * S, b * S:(b + 1) * S].set(in_bias[b])

    # Pre-fused projection weights:  [ Wq | Wk | Wv_h @ Wo_h (per head) ]
    wq, wk, wv, wo = params["wq"], params["wk"], params["wv"], params["wo"]
    bq, bk, bv, bo = params["bq"], params["bk"], params["bv"], params["bo"]
    wvo = jnp.concatenate(
        [wv[:, h * E:(h + 1) * E] @ wo[h * E:(h + 1) * E, :] for h in range(H)], axis=1)
    bvo = jnp.concatenate(
        [bv[:, h * E:(h + 1) * E] @ wo[h * E:(h + 1) * E, :] for h in range(H)], axis=1)
    w_fused = jnp.concatenate([wq, wk, wvo], axis=1).astype(jnp.float32)   # (D, 2D+H*D)
    b_fused = jnp.concatenate([bq, bk, bvo], axis=1).astype(jnp.float32)   # (1, 2D+H*D)

    args = (
        x2, bias_full, w_fused, b_fused, bo,
        params["g_ffn"], params["b_ffn"],
        params["w1"], params["b1"], params["w2"], params["b2"],
        params["g2"], params["be2"],
    )
    out_slab, attn_slab = pl.pallas_call(
        encoder_layer_kernel,
        out_shape=(jax.ShapeDtypeStruct((N, D), jnp.float32),
                   jax.ShapeDtypeStruct((N, H * N), jnp.float32)),
        in_specs=[pl.BlockSpec(memory_space=pltpu.MemorySpace.VMEM) for _ in args],
        out_specs=(pl.BlockSpec(memory_space=pltpu.MemorySpace.VMEM),
                   pl.BlockSpec(memory_space=pltpu.MemorySpace.VMEM)),
        # TODO(synk): for larger B/S add a "parallel" batch grid axis (v7x 2nd core) and
        # bf16 MXU inputs; at B=2, S=8 the kernel is launch-overhead-bound.
    )(*args)

    out2 = out_slab.reshape(B, S, D)

    # attn_slab[b*S+q, h*N + b2*S + k] -> extract the per-batch diagonal blocks.
    a = attn_slab.reshape(B, S, H, B, S)
    attn_w = jnp.stack([a[b, :, :, b, :] for b in range(B)], axis=0)   # (B, S, H, S)
    attn_w = jnp.transpose(attn_w, (0, 2, 1, 3))                       # (B, H, S, S)
    return out2, attn_w


# ------------------------------ pure-JAX reference ---------------------------------
def encoder_layer_reference(x, mask, adjoin_matrix, p):
    """Mirror of the PyTorch EncoderLayer.forward (inference)."""
    B, S, D = x.shape
    H, E = NUM_HEADS, DEPTH

    def ln(t, g, b):
        mu = jnp.mean(t, axis=-1, keepdims=True)
        var = jnp.mean((t - mu) ** 2, axis=-1, keepdims=True)
        return (t - mu) / jnp.sqrt(var + LN_EPS) * g + b

    q = x @ p["wq"] + p["bq"]
    k = x @ p["wk"] + p["bk"]
    v = x @ p["wv"] + p["bv"]

    def split(t):
        return jnp.transpose(t.reshape(B, S, H, E), (0, 2, 1, 3))    # (B,H,S,E)

    qh, kh, vh = split(q), split(k), split(v)
    logits = jnp.einsum("bhqe,bhke->bhqk", qh, kh) / math.sqrt(E)
    logits = logits + mask * (-1e9) + adjoin_matrix
    attn = jax.nn.softmax(logits, axis=-1)
    ctx = jnp.einsum("bhqk,bhke->bhqe", attn, vh)
    concat = jnp.transpose(ctx, (0, 2, 1, 3)).reshape(B, S, D)
    attn_out = concat @ p["wo"] + p["bo"]

    out1 = x + attn_out
    xn = ln(out1, p["g_ffn"], p["b_ffn"])
    inter = jax.nn.relu(xn @ p["w1"] + p["b1"])
    ffn_out = inter @ p["w2"] + p["b2"] + out1
    out2 = ln(out1 + ffn_out, p["g2"], p["be2"])
    return out2, attn


# ------------------------------ parameter init --------------------------------------
def init_params(key):
    ks = jax.random.split(key, 16)

    def lin(kw, kb, din, dout, scale=0.08):
        w = jax.random.normal(kw, (din, dout), jnp.float32) * scale
        b = jax.random.normal(kb, (1, dout), jnp.float32) * scale
        return w, b

    wq, bq = lin(ks[0], ks[1], D_MODEL, D_MODEL)
    wk, bk = lin(ks[2], ks[3], D_MODEL, D_MODEL)
    wv, bv = lin(ks[4], ks[5], D_MODEL, D_MODEL)
    wo, bo = lin(ks[6], ks[7], D_MODEL, D_MODEL)
    w1, b1 = lin(ks[8], ks[9], D_MODEL, DFF)
    w2, b2 = lin(ks[10], ks[11], DFF, D_MODEL)
    g_ffn = 1.0 + 0.1 * jax.random.normal(ks[12], (1, D_MODEL), jnp.float32)
    b_ffn = 0.1 * jax.random.normal(ks[13], (1, D_MODEL), jnp.float32)
    g2 = 1.0 + 0.1 * jax.random.normal(ks[14], (1, D_MODEL), jnp.float32)
    be2 = 0.1 * jax.random.normal(ks[15], (1, D_MODEL), jnp.float32)
    return dict(wq=wq, bq=bq, wk=wk, bk=bk, wv=wv, bv=bv, wo=wo, bo=bo,
                g_ffn=g_ffn, b_ffn=b_ffn, w1=w1, b1=b1, w2=w2, b2=b2,
                g2=g2, be2=be2)


# ----------------------------------- main ---------------------------------------------
if __name__ == "__main__":
    key = jax.random.PRNGKey(0)
    kp, kx, ka = jax.random.split(key, 3)
    params = init_params(kp)

    x = jax.random.normal(kx, (BATCH, SEQ, D_MODEL), jnp.float32)
    adjoin_matrix = 0.1 * jax.random.normal(ka, (BATCH, 1, SEQ, SEQ), jnp.float32)
    mask = jnp.zeros((BATCH, 1, SEQ, SEQ), jnp.float32)
    mask = mask.at[1, :, :, SEQ - 2:].set(1.0)   # pad out the last 2 keys of batch row 1

    out2, attn_w = encoder_layer_forward(x, mask, adjoin_matrix, params)
    out2 = jax.block_until_ready(out2)
    attn_w = jax.block_until_ready(attn_w)

    assert out2.shape == (BATCH, SEQ, D_MODEL)
    assert attn_w.shape == (BATCH, NUM_HEADS, SEQ, SEQ)

    ref_out2, ref_attn = encoder_layer_reference(x, mask, adjoin_matrix, params)
    err_out = float(jnp.max(jnp.abs(out2 - ref_out2)))
    err_attn = float(jnp.max(jnp.abs(attn_w - ref_attn)))
    assert err_out < 2e-2 and err_attn < 2e-2, (err_out, err_attn)

    print("KERNEL_OK")
</pallas_src>

<mosaic_0001>
module attributes {stable_mosaic.version = 11 : i64} {
  func.func @encoder_layer_kernel(%arg0: memref<16x32xf32, #tpu.memory_space<vmem>>, %arg1: memref<16x16xf32, #tpu.memory_space<vmem>>, %arg2: memref<32x192xf32, #tpu.memory_space<vmem>>, %arg3: memref<1x192xf32, #tpu.memory_space<vmem>>, %arg4: memref<1x32xf32, #tpu.memory_space<vmem>>, %arg5: memref<1x32xf32, #tpu.memory_space<vmem>>, %arg6: memref<1x32xf32, #tpu.memory_space<vmem>>, %arg7: memref<32x64xf32, #tpu.memory_space<vmem>>, %arg8: memref<1x64xf32, #tpu.memory_space<vmem>>, %arg9: memref<64x32xf32, #tpu.memory_space<vmem>>, %arg10: memref<1x32xf32, #tpu.memory_space<vmem>>, %arg11: memref<1x32xf32, #tpu.memory_space<vmem>>, %arg12: memref<1x32xf32, #tpu.memory_space<vmem>>, %arg13: memref<16x32xf32, #tpu.memory_space<vmem>>, %arg14: memref<16x64xf32, #tpu.memory_space<vmem>>) attributes {dimension_semantics = [], scalar_prefetch = 0 : i64, scratch_operands = 0 : i64, tpu.core_type = #tpu.core_type<tc>} {
    %c0 = arith.constant 0 : index
    %c0_0 = arith.constant 0 : index
    %0 = vector.load %arg0[%c0, %c0_0] : memref<16x32xf32, #tpu.memory_space<vmem>>, vector<16x32xf32>
    %c0_1 = arith.constant 0 : index
    %c0_2 = arith.constant 0 : index
    %1 = vector.load %arg1[%c0_1, %c0_2] : memref<16x16xf32, #tpu.memory_space<vmem>>, vector<16x16xf32>
    %c0_3 = arith.constant 0 : index
    %c0_4 = arith.constant 0 : index
    %2 = vector.load %arg2[%c0_3, %c0_4] : memref<32x192xf32, #tpu.memory_space<vmem>>, vector<32x192xf32>
    %cst = arith.constant dense<0.000000e+00> : vector<16x192xf32>
    %3 = tpu.matmul %0, %2, %cst {dimension_numbers = #tpu.dot_dimension_numbers<[1], [0], [0], [1], [0, 0, 1, 1], [], []>} : vector<16x32xf32>, vector<32x192xf32>, vector<16x192xf32> -> vector<16x192xf32>
    %c0_5 = arith.constant 0 : index
    %c0_6 = arith.constant 0 : index
    %4 = vector.load %arg3[%c0_5, %c0_6] : memref<1x192xf32, #tpu.memory_space<vmem>>, vector<1x192xf32>
    %5 = vector.broadcast %4 : vector<1x192xf32> to vector<16x192xf32>
    %6 = arith.addf %3, %5 : vector<16x192xf32>
    %7 = vector.extract_strided_slice %6 {offsets = [0, 0], sizes = [16, 32], strides = [1, 1]} : vector<16x192xf32> to vector<16x32xf32>
    %cst_7 = arith.constant 0.353553385 : f32
    %8 = vector.broadcast %cst_7 : f32 to vector<16x32xf32>
    %9 = arith.mulf %7, %8 : vector<16x32xf32>
    %10 = vector.extract_strided_slice %6 {offsets = [0, 32], sizes = [16, 32], strides = [1, 1]} : vector<16x192xf32> to vector<16x32xf32>
    %11 = vector.extract_strided_slice %9 {offsets = [0, 0], sizes = [16, 8], strides = [1, 1]} : vector<16x32xf32> to vector<16x8xf32>
    %12 = vector.extract_strided_slice %10 {offsets = [0, 0], sizes = [16, 8], strides = [1, 1]} : vector<16x32xf32> to vector<16x8xf32>
    %13 = vector.extract_strided_slice %6 {offsets = [0, 64], sizes = [16, 32], strides = [1, 1]} : vector<16x192xf32> to vector<16x32xf32>
    %cst_8 = arith.constant dense<0.000000e+00> : vector<16x16xf32>
    %14 = tpu.matmul %11, %12, %cst_8 {dimension_numbers = #tpu.dot_dimension_numbers<[1], [1], [0], [0], [0, 0, 1, 0], [], []>} : vector<16x8xf32>, vector<16x8xf32>, vector<16x16xf32> -> vector<16x16xf32>
    %15 = arith.addf %14, %1 : vector<16x16xf32>
    %cst_9 = arith.constant dense<0xFF800000> : vector<16xf32>
    %16 = vector.multi_reduction <maximumf>, %15, %cst_9 [1] : vector<16x16xf32> to vector<16xf32>
    %17 = vector.shape_cast %16 : vector<16xf32> to vector<16x1xf32>
    %18 = vector.broadcast %17 : vector<16x1xf32> to vector<16x16xf32>
    %19 = arith.subf %15, %18 : vector<16x16xf32>
    %20 = math.exp %19 : vector<16x16xf32>
    %cst_10 = arith.constant dense<0.000000e+00> : vector<16xf32>
    %21 = vector.multi_reduction <add>, %20, %cst_10 [1] : vector<16x16xf32> to vector<16xf32>
    %22 = vector.shape_cast %21 : vector<16xf32> to vector<16x1xf32>
    %23 = vector.broadcast %22 : vector<16x1xf32> to vector<16x16xf32>
    %24 = arith.divf %20, %23 : vector<16x16xf32>
    %cst_11 = arith.constant dense<0.000000e+00> : vector<16x32xf32>
    %25 = tpu.matmul %24, %13, %cst_11 {dimension_numbers = #tpu.dot_dimension_numbers<[1], [0], [0], [1], [0, 0, 1, 1], [], []>} : vector<16x16xf32>, vector<16x32xf32>, vector<16x32xf32> -> vector<16x32xf32>
    %26 = vector.extract_strided_slice %9 {offsets = [0, 8], sizes = [16, 8], strides = [1, 1]} : vector<16x32xf32> to vector<16x8xf32>
    %27 = vector.extract_strided_slice %10 {offsets = [0, 8], sizes = [16, 8], strides = [1, 1]} : vector<16x32xf32> to vector<16x8xf32>
    %28 = vector.extract_strided_slice %6 {offsets = [0, 96], sizes = [16, 32], strides = [1, 1]} : vector<16x192xf32> to vector<16x32xf32>
    %cst_12 = arith.constant dense<0.000000e+00> : vector<16x16xf32>
    %29 = tpu.matmul %26, %27, %cst_12 {dimension_numbers = #tpu.dot_dimension_numbers<[1], [1], [0], [0], [0, 0, 1, 0], [], []>} : vector<16x8xf32>, vector<16x8xf32>, vector<16x16xf32> -> vector<16x16xf32>
    %30 = arith.addf %29, %1 : vector<16x16xf32>
    %cst_13 = arith.constant dense<0xFF800000> : vector<16xf32>
    %31 = vector.multi_reduction <maximumf>, %30, %cst_13 [1] : vector<16x16xf32> to vector<16xf32>
    %32 = vector.shape_cast %31 : vector<16xf32> to vector<16x1xf32>
    %33 = vector.broadcast %32 : vector<16x1xf32> to vector<16x16xf32>
    %34 = arith.subf %30, %33 : vector<16x16xf32>
    %35 = math.exp %34 : vector<16x16xf32>
    %cst_14 = arith.constant dense<0.000000e+00> : vector<16xf32>
    %36 = vector.multi_reduction <add>, %35, %cst_14 [1] : vector<16x16xf32> to vector<16xf32>
    %37 = vector.shape_cast %36 : vector<16xf32> to vector<16x1xf32>
    %38 = vector.broadcast %37 : vector<16x1xf32> to vector<16x16xf32>
    %39 = arith.divf %35, %38 : vector<16x16xf32>
    %cst_15 = arith.constant dense<0.000000e+00> : vector<16x32xf32>
    %40 = tpu.matmul %39, %28, %cst_15 {dimension_numbers = #tpu.dot_dimension_numbers<[1], [0], [0], [1], [0, 0, 1, 1], [], []>} : vector<16x16xf32>, vector<16x32xf32>, vector<16x32xf32> -> vector<16x32xf32>
    %41 = arith.addf %25, %40 : vector<16x32xf32>
    %42 = vector.extract_strided_slice %9 {offsets = [0, 16], sizes = [16, 8], strides = [1, 1]} : vector<16x32xf32> to vector<16x8xf32>
    %43 = vector.extract_strided_slice %10 {offsets = [0, 16], sizes = [16, 8], strides = [1, 1]} : vector<16x32xf32> to vector<16x8xf32>
    %44 = vector.extract_strided_slice %6 {offsets = [0, 128], sizes = [16, 32], strides = [1, 1]} : vector<16x192xf32> to vector<16x32xf32>
    %cst_16 = arith.constant dense<0.000000e+00> : vector<16x16xf32>
    %45 = tpu.matmul %42, %43, %cst_16 {dimension_numbers = #tpu.dot_dimension_numbers<[1], [1], [0], [0], [0, 0, 1, 0], [], []>} : vector<16x8xf32>, vector<16x8xf32>, vector<16x16xf32> -> vector<16x16xf32>
    %46 = arith.addf %45, %1 : vector<16x16xf32>
    %cst_17 = arith.constant dense<0xFF800000> : vector<16xf32>
    %47 = vector.multi_reduction <maximumf>, %46, %cst_17 [1] : vector<16x16xf32> to vector<16xf32>
    %48 = vector.shape_cast %47 : vector<16xf32> to vector<16x1xf32>
    %49 = vector.broadcast %48 : vector<16x1xf32> to vector<16x16xf32>
    %50 = arith.subf %46, %49 : vector<16x16xf32>
    %51 = math.exp %50 : vector<16x16xf32>
    %cst_18 = arith.constant dense<0.000000e+00> : vector<16xf32>
    %52 = vector.multi_reduction <add>, %51, %cst_18 [1] : vector<16x16xf32> to vector<16xf32>
    %53 = vector.shape_cast %52 : vector<16xf32> to vector<16x1xf32>
    %54 = vector.broadcast %53 : vector<16x1xf32> to vector<16x16xf32>
    %55 = arith.divf %51, %54 : vector<16x16xf32>
    %cst_19 = arith.constant dense<0.000000e+00> : vector<16x32xf32>
    %56 = tpu.matmul %55, %44, %cst_19 {dimension_numbers = #tpu.dot_dimension_numbers<[1], [0], [0], [1], [0, 0, 1, 1], [], []>} : vector<16x16xf32>, vector<16x32xf32>, vector<16x32xf32> -> vector<16x32xf32>
    %57 = arith.addf %41, %56 : vector<16x32xf32>
    %58 = vector.extract_strided_slice %9 {offsets = [0, 24], sizes = [16, 8], strides = [1, 1]} : vector<16x32xf32> to vector<16x8xf32>
    %59 = vector.extract_strided_slice %10 {offsets = [0, 24], sizes = [16, 8], strides = [1, 1]} : vector<16x32xf32> to vector<16x8xf32>
    %60 = vector.extract_strided_slice %6 {offsets = [0, 160], sizes = [16, 32], strides = [1, 1]} : vector<16x192xf32> to vector<16x32xf32>
    %cst_20 = arith.constant dense<0.000000e+00> : vector<16x16xf32>
    %61 = tpu.matmul %58, %59, %cst_20 {dimension_numbers = #tpu.dot_dimension_numbers<[1], [1], [0], [0], [0, 0, 1, 0], [], []>} : vector<16x8xf32>, vector<16x8xf32>, vector<16x16xf32> -> vector<16x16xf32>
    %62 = arith.addf %61, %1 : vector<16x16xf32>
    %cst_21 = arith.constant dense<0xFF800000> : vector<16xf32>
    %63 = vector.multi_reduction <maximumf>, %62, %cst_21 [1] : vector<16x16xf32> to vector<16xf32>
    %64 = vector.shape_cast %63 : vector<16xf32> to vector<16x1xf32>
    %65 = vector.broadcast %64 : vector<16x1xf32> to vector<16x16xf32>
    %66 = arith.subf %62, %65 : vector<16x16xf32>
    %67 = math.exp %66 : vector<16x16xf32>
    %cst_22 = arith.constant dense<0.000000e+00> : vector<16xf32>
    %68 = vector.multi_reduction <add>, %67, %cst_22 [1] : vector<16x16xf32> to vector<16xf32>
    %69 = vector.shape_cast %68 : vector<16xf32> to vector<16x1xf32>
    %70 = vector.broadcast %69 : vector<16x1xf32> to vector<16x16xf32>
    %71 = arith.divf %67, %70 : vector<16x16xf32>
    %cst_23 = arith.constant dense<0.000000e+00> : vector<16x32xf32>
    %72 = tpu.matmul %71, %60, %cst_23 {dimension_numbers = #tpu.dot_dimension_numbers<[1], [0], [0], [1], [0, 0, 1, 1], [], []>} : vector<16x16xf32>, vector<16x32xf32>, vector<16x32xf32> -> vector<16x32xf32>
    %73 = arith.addf %57, %72 : vector<16x32xf32>
    %74 = tpu.concatenate %24, %39, %55, %71 in 1 : vector<16x16xf32>, vector<16x16xf32>, vector<16x16xf32>, vector<16x16xf32> -> vector<16x64xf32>
    %c0_24 = arith.constant 0 : index
    %c0_25 = arith.constant 0 : index
    %75 = vector.load %arg14[%c0_24, %c0_25] : memref<16x64xf32, #tpu.memory_space<vmem>>, vector<16x64xf32>
    tpu.vector_store %arg14[%c0_24, %c0_25], %74 {strides = array<i32>} : memref<16x64xf32, #tpu.memory_space<vmem>>, vector<16x64xf32>,
    %c0_26 = arith.constant 0 : index
    %c0_27 = arith.constant 0 : index
    %76 = vector.load %arg4[%c0_26, %c0_27] : memref<1x32xf32, #tpu.memory_space<vmem>>, vector<1x32xf32>
    %77 = vector.broadcast %76 : vector<1x32xf32> to vector<16x32xf32>
    %78 = arith.addf %73, %77 : vector<16x32xf32>
    %79 = arith.addf %0, %78 : vector<16x32xf32>
    %c0_28 = arith.constant 0 : index
    %c0_29 = arith.constant 0 : index
    %80 = vector.load %arg5[%c0_28, %c0_29] : memref<1x32xf32, #tpu.memory_space<vmem>>, vector<1x32xf32>
    %c0_30 = arith.constant 0 : index
    %c0_31 = arith.constant 0 : index
    %81 = vector.load %arg6[%c0_30, %c0_31] : memref<1x32xf32, #tpu.memory_space<vmem>>, vector<1x32xf32>
    %cst_32 = arith.constant dense<0.000000e+00> : vector<16xf32>
    %82 = vector.multi_reduction <add>, %79, %cst_32 [1] : vector<16x32xf32> to vector<16xf32>
    %83 = vector.shape_cast %82 : vector<16xf32> to vector<16x1xf32>
    %cst_33 = arith.constant 3.200000e+01 : f32
    %84 = vector.broadcast %cst_33 : f32 to vector<16x1xf32>
    %85 = arith.divf %83, %84 : vector<16x1xf32>
    %86 = vector.broadcast %85 : vector<16x1xf32> to vector<16x32xf32>
    %87 = arith.subf %79, %86 : vector<16x32xf32>
    %88 = vector.broadcast %85 : vector<16x1xf32> to vector<16x32xf32>
    %89 = arith.subf %79, %88 : vector<16x32xf32>
    %90 = arith.mulf %87, %89 : vector<16x32xf32>
    %cst_34 = arith.constant dense<0.000000e+00> : vector<16xf32>
    %91 = vector.multi_reduction <add>, %90, %cst_34 [1] : vector<16x32xf32> to vector<16xf32>
    %92 = vector.shape_cast %91 : vector<16xf32> to vector<16x1xf32>
    %cst_35 = arith.constant 3.200000e+01 : f32
    %93 = vector.broadcast %cst_35 : f32 to vector<16x1xf32>
    %94 = arith.divf %92, %93 : vector<16x1xf32>
    %95 = vector.broadcast %85 : vector<16x1xf32> to vector<16x32xf32>
    %96 = arith.subf %79, %95 : vector<16x32xf32>
    %cst_36 = arith.constant 9.99999997E-7 : f32
    %97 = vector.broadcast %cst_36 : f32 to vector<16x1xf32>
    %98 = arith.addf %94, %97 : vector<16x1xf32>
    %99 = math.rsqrt %98 : vector<16x1xf32>
    %100 = vector.broadcast %99 : vector<16x1xf32> to vector<16x32xf32>
    %101 = arith.mulf %96, %100 : vector<16x32xf32>
    %102 = vector.broadcast %80 : vector<1x32xf32> to vector<16x32xf32>
    %103 = arith.mulf %101, %102 : vector<16x32xf32>
    %104 = vector.broadcast %81 : vector<1x32xf32> to vector<16x32xf32>
    %105 = arith.addf %103, %104 : vector<16x32xf32>
    %c0_37 = arith.constant 0 : index
    %c0_38 = arith.constant 0 : index
    %106 = vector.load %arg7[%c0_37, %c0_38] : memref<32x64xf32, #tpu.memory_space<vmem>>, vector<32x64xf32>
    %cst_39 = arith.constant dense<0.000000e+00> : vector<16x64xf32>
    %107 = tpu.matmul %105, %106, %cst_39 {dimension_numbers = #tpu.dot_dimension_numbers<[1], [0], [0], [1], [0, 0, 1, 1], [], []>} : vector<16x32xf32>, vector<32x64xf32>, vector<16x64xf32> -> vector<16x64xf32>
    %c0_40 = arith.constant 0 : index
    %c0_41 = arith.constant 0 : index
    %108 = vector.load %arg8[%c0_40, %c0_41] : memref<1x64xf32, #tpu.memory_space<vmem>>, vector<1x64xf32>
    %109 = vector.broadcast %108 : vector<1x64xf32> to vector<16x64xf32>
    %110 = arith.addf %107, %109 : vector<16x64xf32>
    %cst_42 = arith.constant 0.000000e+00 : f32
    %111 = vector.broadcast %cst_42 : f32 to vector<16x64xf32>
    %112 = arith.maximumf %110, %111 : vector<16x64xf32>
    %c0_43 = arith.constant 0 : index
    %c0_44 = arith.constant 0 : index
    %113 = vector.load %arg9[%c0_43, %c0_44] : memref<64x32xf32, #tpu.memory_space<vmem>>, vector<64x32xf32>
    %cst_45 = arith.constant dense<0.000000e+00> : vector<16x32xf32>
    %114 = tpu.matmul %112, %113, %cst_45 {dimension_numbers = #tpu.dot_dimension_numbers<[1], [0], [0], [1], [0, 0, 1, 1], [], []>} : vector<16x64xf32>, vector<64x32xf32>, vector<16x32xf32> -> vector<16x32xf32>
    %c0_46 = arith.constant 0 : index
    %c0_47 = arith.constant 0 : index
    %115 = vector.load %arg10[%c0_46, %c0_47] : memref<1x32xf32, #tpu.memory_space<vmem>>, vector<1x32xf32>
    %116 = vector.broadcast %115 : vector<1x32xf32> to vector<16x32xf32>
    %117 = arith.addf %114, %116 : vector<16x32xf32>
    %118 = arith.addf %117, %79 : vector<16x32xf32>
    %119 = arith.addf %79, %118 : vector<16x32xf32>
    %c0_48 = arith.constant 0 : index
    %c0_49 = arith.constant 0 : index
    %120 = vector.load %arg11[%c0_48, %c0_49] : memref<1x32xf32, #tpu.memory_space<vmem>>, vector<1x32xf32>
    %c0_50 = arith.constant 0 : index
    %c0_51 = arith.constant 0 : index
    %121 = vector.load %arg12[%c0_50, %c0_51] : memref<1x32xf32, #tpu.memory_space<vmem>>, vector<1x32xf32>
    %cst_52 = arith.constant dense<0.000000e+00> : vector<16xf32>
    %122 = vector.multi_reduction <add>, %119, %cst_52 [1] : vector<16x32xf32> to vector<16xf32>
    %123 = vector.shape_cast %122 : vector<16xf32> to vector<16x1xf32>
    %cst_53 = arith.constant 3.200000e+01 : f32
    %124 = vector.broadcast %cst_53 : f32 to vector<16x1xf32>
    %125 = arith.divf %123, %124 : vector<16x1xf32>
    %126 = vector.broadcast %125 : vector<16x1xf32> to vector<16x32xf32>
    %127 = arith.subf %119, %126 : vector<16x32xf32>
    %128 = vector.broadcast %125 : vector<16x1xf32> to vector<16x32xf32>
    %129 = arith.subf %119, %128 : vector<16x32xf32>
    %130 = arith.mulf %127, %129 : vector<16x32xf32>
    %cst_54 = arith.constant dense<0.000000e+00> : vector<16xf32>
    %131 = vector.multi_reduction <add>, %130, %cst_54 [1] : vector<16x32xf32> to vector<16xf32>
    %132 = vector.shape_cast %131 : vector<16xf32> to vector<16x1xf32>
    %cst_55 = arith.constant 3.200000e+01 : f32
    %133 = vector.broadcast %cst_55 : f32 to vector<16x1xf32>
    %134 = arith.divf %132, %133 : vector<16x1xf32>
    %135 = vector.broadcast %125 : vector<16x1xf32> to vector<16x32xf32>
    %136 = arith.subf %119, %135 : vector<16x32xf32>
    %cst_56 = arith.constant 9.99999997E-7 : f32
    %137 = vector.broadcast %cst_56 : f32 to vector<16x1xf32>
    %138 = arith.addf %134, %137 : vector<16x1xf32>
    %139 = math.rsqrt %138 : vector<16x1xf32>
    %140 = vector.broadcast %139 : vector<16x1xf32> to vector<16x32xf32>
    %141 = arith.mulf %136, %140 : vector<16x32xf32>
    %142 = vector.broadcast %120 : vector<1x32xf32> to vector<16x32xf32>
    %143 = arith.mulf %141, %142 : vector<16x32xf32>
    %144 = vector.broadcast %121 : vector<1x32xf32> to vector<16x32xf32>
    %145 = arith.addf %143, %144 : vector<16x32xf32>
    %c0_57 = arith.constant 0 : index
    %c0_58 = arith.constant 0 : index
    %146 = vector.load %arg13[%c0_57, %c0_58] : memref<16x32xf32, #tpu.memory_space<vmem>>, vector<16x32xf32>
    tpu.vector_store %arg13[%c0_57, %c0_58], %145 {strides = array<i32>} : memref<16x32xf32, #tpu.memory_space<vmem>>, vector<16x32xf32>,
    return
  }
}

</mosaic_0001>

<bundles_post_ra>
// kernel: encoder_layer_forward.1
= control target key start
LH: loop header
LB: loop body
LE: loop exit
PB: predicated region body
PF: predicated region fallthrough
CT: control target
= control target key end

     0   :  { %s1452_s0 = inlined_call_operand.vmem [shape: f32[16,32], index: 0, kind: input, shape index: {}]   ;;  %s1453_s1 = inlined_call_operand.vmem [shape: f32[16,16], index: 1, kind: input, shape index: {}]   ;;  %s1454_s2 = inlined_call_operand.vmem [shape: f32[32,192], index: 2, kind: input, shape index: {}]   ;;  %s1455_s3 = inlined_call_operand.vmem [shape: f32[1,192], index: 3, kind: input, shape index: {}]   ;;  %s1456_s4 = inlined_call_operand.vmem [shape: f32[1,32], index: 4, kind: input, shape index: {}]   ;;  %s1457_s5 = inlined_call_operand.vmem [shape: f32[1,32], index: 5, kind: input, shape index: {}]   ;;  %s1458_s6 = inlined_call_operand.vmem [shape: f32[1,32], index: 6, kind: input, shape index: {}]   ;;  %s1459_s7 = inlined_call_operand.vmem [shape: f32[32,64], index: 7, kind: input, shape index: {}]   ;;  %s1460_s8 = inlined_call_operand.vmem [shape: f32[1,64], index: 8, kind: input, shape index: {}]   ;;  %s1461_s9 = inlined_call_operand.vmem [shape: f32[64,32], index: 9, kind: input, shape index: {}]   ;;  %s1462_s10 = inlined_call_operand.vmem [shape: f32[1,32], index: 10, kind: input, shape index: {}]   ;;  %s1463_s11 = inlined_call_operand.vmem [shape: f32[1,32], index: 11, kind: input, shape index: {}]   ;;  %s1464_s12 = inlined_call_operand.vmem [shape: f32[1,32], index: 12, kind: input, shape index: {}]   ;;  %s1465_s13 = inlined_call_operand.hbm [shape: f32[16,32], index: 13, kind: output, shape index: {0}]   ;;  %s1466_s14 = inlined_call_operand.vmem [shape: f32[16,64], index: 14, kind: output, shape index: {1}]  }
   0x1   :  { %v57_v0 = vld [vmem:[%s1454_s2 + $0x30] sm:$0xff]  ;;  %v55_v1 = vld [vmem:[%s1454_s2 + $0x20] sm:$0xff] }
   0x2   :  { %84 = vmatpush.msra.mxu0 %v57_v0  ;;  %v53_v2 = vld [vmem:[%s1454_s2 + $0x10] sm:$0xff]  ;;  %v51_v3 = vld [vmem:[%s1454_s2] sm:$0xff] }
   0x4   :  { %85 = vmatpush.msra.mxu0 %v55_v1 }
   0x5   :  { %20 = vsyncpa [#allocation3], 0  ;;  %v1115_v4 = vld [vmem:[%s1452_s0] sm:$0xff]  ;;  %vm65_vm0 = vcmask 261120   ;;  %v1122_v5 = vld [vmem:[%s1452_s0 + $0x8] sm:$0xff]  ;;  %s1010_s27 = smov 96  }
   0x6   :  { %86 = vmatpush.msra.mxu0 %v53_v2  ;;  %v1129_v6 = vld [vmem:[%s1455_s3] sm:$0x3]  ;;  %s1011_s28 = smov 120   ;;  %s1012_s0 = smov 88   ;;  %vm126_vm1 = vcmask 64512   ;;  %vm160_vm2 = vcmask 130048  }
   0x7   :  { %v61_v7 = vperm.slane %v1129_v6, 0  ;;  %v1153_v20 = vld [vmem:[%s1453_s1] sm:$0xff]  ;;  %v1160_v24 = vld [vmem:[%s1453_s1 + $0x8] sm:$0xff]  ;;  %s1013_s16 = smov 80   ;;  %s1014_s17 = smov 32  }
   0x8   :  { %87 = vmatpush.msra.mxu0 %v51_v3  ;;  %s1015_s18 = smov 72   ;;  %s1016_s1 = smov 104  }
   0x9   :  { %873 = vmatmul.msk.f32.vlgmr.msra.gmra.mxu0 %vm65_vm0, %v1115_v4  ;;  %s1017_s19 = smov 112   ;;  %s1021_s3 = smov 48  }
   0xa   :  { %s1022_s24 = smov [#allocation2]  }
   0xb   :  { %s855_s25 = sshll.u32 %s1022_s24, 4  ;;  %s856_s25 = int_to_ptr.vmem [resolvable:$true] %s855_s25 }
  0x11   :  { %874 = vmatmul.msk.f32.gmra.mxu0 %vm65_vm0, %v1122_v5 }
  0x86   :  { %v89_v8 = vpop.f32.mrf.mxu0 }
  0x87   :  { %v90_v9 = vadd.f32 %v89_v8, %v61_v7 }
  0x89   :  { %122 = vrot.lane.b32.xlu2 %v90_v9, %s1010_s27  ;;  %v1133_v10 = vmul.f32 0.35355338, %v90_v9 }
  0x8b   :  { %209 = vrot.lane.b32.xlu1 %v1133_v10, %s1011_s28 }
  0x8e   :  { %v92_v11 = vpop.f32.mrf.mxu0 }
  0x8f   :  { %v93_v12 = vadd.f32 %v92_v11, %v61_v7 }
  0x91   :  { %215 = vrot.lane.b32.xlu0 %v93_v12, %s1012_s0  ;;  %v1136_v13 = vmul.f32 0.35355338, %v93_v12  ;;  %v1164_v28 = vpack.i.bf16 %v90_v9, %v93_v12 }
  0x93   :  { %211 = vrot.lane.b32.xlu1 %v1136_v13, %s1011_s28  ;;  %s857_s28 = sshll.u32 %s1465_s13, 4  ;;  %s858_s28 = int_to_ptr.hbm [resolvable:$true] %s857_s28 }
  0x99   :  { %213 = vrot.lane.b32.xlu0 %v90_v9, %s1012_s0 }
  0xa1   :  { %124 = vrot.lane.b32.xlu0 %v93_v12, %s1010_s27 }
  0xe3   :  { %v123_v19 = vpop.permute.xlu2 %122 }
  0xfd   :  { %v210_v16 = vpop.permute.xlu1 %209 }
 0x103   :  { %v216_v14 = vpop.permute.xlu0 %215 }
 0x104   :  { %881 = vmatpush.xpose.msk.msra.mxu3 %vm126_vm1, %v216_v14 }
 0x105   :  { %v212_v18 = vpop.permute.xlu1 %211 }
 0x10b   :  { %v214_v15 = vpop.permute.xlu0 %213 }
 0x10c   :  { %882 = vmatpush.xpose.msk.msra.mxu3 %vm126_vm1, %v214_v15 }
 0x10f   :  { %883 = vmatmul.msk.f32.vlgmr.msra.gmra.mxu3 %vm126_vm1, %v210_v16 }
 0x113   :  { %v125_v17 = vpop.permute.xlu0 %124 }
 0x114   :  { %877 = vmatpush.xpose.msk.msra.mxu2 %vm126_vm1, %v125_v17 }
 0x117   :  { %884 = vmatmul.msk.f32.gmra.mxu3 %vm126_vm1, %v212_v18 }
 0x118   :  { %878 = vmatpush.xpose.msk.msra.mxu2 %vm126_vm1, %v123_v19  ;;  %v58_v19 = vld [vmem:[%s1454_s2 + $0x38] sm:$0xff] }
 0x119   :  { %107 = vmatpush.msra.mxu1 %v58_v19 }
 0x11b   :  { %879 = vmatmul.msk.f32.vlgmr.msra.gmra.mxu2 %vm126_vm1, %v1133_v10 }
 0x123   :  { %880 = vmatmul.msk.f32.gmra.mxu2 %vm126_vm1, %v1136_v13 }
 0x192   :  { %v242_v21 = vpop.f32.mrf.mxu3 }
 0x193   :  { %v243_v22 = vadd.f32 %v242_v21, %v1153_v20  ;;  %v56_v21 = vld [vmem:[%s1454_s2 + $0x28] sm:$0xff] }
 0x194   :  { %108 = vmatpush.msra.mxu1 %v56_v21 }
 0x195   :  { %v248_v23 = vsel %vm160_vm2, %v243_v22, -inf }
 0x196   :  { %249 = vmax.xlane.f32.xlu2 %v248_v23  ;;  %v54_v23 = vld [vmem:[%s1454_s2 + $0x18] sm:$0xff] }
 0x197   :  { %109 = vmatpush.msra.mxu1 %v54_v23 }
 0x19a   :  { %v245_v25 = vpop.f32.mrf.mxu3 }
 0x19b   :  { %v246_v26 = vadd.f32 %v245_v25, %v1160_v24  ;;  %v52_v25 = vld [vmem:[%s1454_s2 + $0x8] sm:$0xff]  ;;  %s1018_s2 = smov 64  }
 0x19c   :  { %110 = vmatpush.msra.mxu1 %v52_v25 }
 0x19d   :  { %v251_v27 = vsel %vm160_vm2, %v246_v26, -inf  ;;  %875 = vmatmul.msk.f32.vlgmr.msra.gmra.mxu1 %vm65_vm0, %v1115_v4 }
 0x19e   :  { %252 = vmax.xlane.f32.xlu2 %v251_v27  ;;  %v154_v29 = vpop.f32.mrf.mxu2 }
 0x19f   :  { %v1186_v50 = vadd.f32 %v154_v29, %v1153_v20 }
 0x1a1   :  { %v161_v51 = vsel %vm160_vm2, %v1186_v50, -inf }
 0x1a5   :  { %876 = vmatmul.msk.f32.gmra.mxu1 %vm65_vm0, %v1122_v5 }
 0x1a6   :  { %v157_v30 = vpop.f32.mrf.mxu2 }
 0x1a7   :  { %v1171_v31 = vadd.f32 %v157_v30, %v1160_v24 }
 0x1a9   :  { %v164_v32 = vsel %vm160_vm2, %v1171_v31, -inf }
 0x1b6   :  { %372 = vrot.lane.b32.xlu2 %v93_v12, %s1013_s16 }
 0x1be   :  { %921 = vrot.lane.b32.xlu2 %v1164_v28, %s1014_s17 }
 0x1c6   :  { %370 = vrot.lane.b32.xlu2 %v90_v9, %s1013_s16 }
 0x1ce   :  { %490 = vrot.lane.b32.xlu2 %v93_v12, %s1015_s18 }
 0x1d6   :  { %488 = vrot.lane.b32.xlu2 %v90_v9, %s1015_s18 }
 0x1de   :  { %484 = vrot.lane.b32.xlu2 %v1133_v10, %s1016_s1 }
 0x207   :  { %165 = vmax.xlane.f32.xlu2 %v164_v32 }
 0x209   :  { %v250_v33 = vpop.xlane.xlu2 %249 }
 0x20a   :  { %v254_v34 = vsub.f32 %v243_v22, %v250_v33 }
 0x20c   :  { %v256_v35 = vmul.f32 1.442695, %v254_v34 }
 0x20e   :  { %942 = vpow2.f32 %v256_v35 }
 0x211   :  { %v253_v36 = vpop.xlane.xlu2 %252 }
 0x212   :  { %v255_v37 = vsub.f32 %v246_v26, %v253_v36 }
 0x214   :  { %v943_v38 = vpop.eup %942  ;;  %v258_v39 = vmul.f32 1.442695, %v255_v37 }
 0x215   :  { %v260_v40 = vsel %vm160_vm2, %v943_v38, 0.0 }
 0x216   :  { %944 = vpow2.f32 %v258_v39  ;;  %261 = vadd.xlane.f32.xlu1 %v260_v40 }
 0x219   :  { %v373_v41 = vpop.permute.xlu2 %372 }
 0x21a   :  { %889 = vmatpush.xpose.msk.msrb.mxu2 %vm126_vm1, %v373_v41 }
 0x21c   :  { %v945_v42 = vpop.eup %944 }
 0x21d   :  { %v263_v43 = vsel %vm160_vm2, %v945_v42, 0.0 }
 0x21e   :  { %264 = vadd.xlane.f32.xlu0 %v263_v43 }
 0x221   :  { %v922_v44 = vpop.permute.xlu2 %921 }
 0x222   :  { %v923_v45 = vunpack.i.l.bf16 %v922_v44  ;;  %v924_v46 = vunpack.i.h.bf16 %v922_v44 }
 0x224   :  { %322 = vmatpush.msrb.mxu0 %v923_v45 }
 0x226   :  { %323 = vmatpush.msrb.mxu0 %v924_v46 }
 0x229   :  { %v371_v47 = vpop.permute.xlu2 %370 }
 0x22a   :  { %890 = vmatpush.xpose.msk.msrb.mxu2 %vm126_vm1, %v371_v47 }
 0x22f   :  { %366 = vrot.lane.b32.xlu1 %v1133_v10, %s1017_s19 }
 0x231   :  { %v491_v48 = vpop.permute.xlu2 %490 }
 0x232   :  { %368 = vrot.lane.b32.xlu0 %v1136_v13, %s1017_s19  ;;  %895 = vmatpush.xpose.msk.msra.mxu0 %vm126_vm1, %v491_v48 }
 0x237   :  { %486 = vrot.lane.b32.xlu1 %v1136_v13, %s1016_s1 }
 0x239   :  { %v489_v49 = vpop.permute.xlu2 %488 }
 0x23a   :  { %896 = vmatpush.xpose.msk.msra.mxu0 %vm126_vm1, %v489_v49 }
 0x241   :  { %v485_v17 = vpop.permute.xlu2 %484 }
 0x25c   :  { %162 = vmax.xlane.f32.xlu0 %v161_v51 }
 0x27a   :  { %v166_v26 = vpop.xlane.xlu2 %165 }
 0x27b   :  { %v168_v29 = vsub.f32 %v1171_v31, %v166_v26 }
 0x27d   :  { %v171_v35 = vmul.f32 1.442695, %v168_v29 }
 0x289   :  { %v262_v52 = vpop.xlane.xlu1 %261 }
 0x28a   :  { %946 = vrcp.f32 %v262_v52  ;;  %v277_v57 = vand.u32 2147483648, %v262_v52  ;;  %v275_v59 = vand.u32 2147483647, %v262_v52  ;;  %vm271_vm4 = vweird.f32 %v262_v52 }
 0x28c   :  { %v278_v62 = vor.u32 1.1754944e-38, %v277_v57  ;;  %vm276_vm6 = vcmp.eq.f32.partialorder %v275_v59, 8.507059e+37  ;;  %v62_v59 = vperm.slane %v1129_v6, 1 }
 0x290   :  { %v947_v53 = vpop.eup %946 }
 0x291   :  { %v267_v54 = vmul.f32 %v947_v53, %v262_v52  ;;  %v265_v55 = vpop.xlane.xlu0 %264  ;;  %vm272_vm3 = vweird.f32 %v947_v53 }
 0x292   :  { %948 = vrcp.f32 %v265_v55  ;;  %vm273_vm5 = vmor %vm271_vm4, %vm272_vm3  ;;  %v292_v7 = vand.u32 2147483648, %v265_v55  ;;  %v290_v9 = vand.u32 2147483647, %v265_v55  ;;  %vm286_vm8 = vweird.f32 %v265_v55 }
 0x293   :  { %v268_v56 = vsub.f32 1.0, %v267_v54  ;;  %950 = vpow2.f32 %v171_v35 }
 0x294   :  { %v293_v11 = vor.u32 1.1754944e-38, %v292_v7  ;;  %vm291_vm10 = vcmp.eq.f32.partialorder %v290_v9, 8.507059e+37 }
 0x295   :  { %v269_v58 = vmul.f32 %v947_v53, %v268_v56 }
 0x297   :  { %v270_v60 = vadd.f32 %v947_v53, %v269_v58 }
 0x298   :  { %v949_v61 = vpop.eup %948 }
 0x299   :  { %v282_v63 = vmul.f32 %v949_v61, %v265_v55  ;;  %v274_v0 = vsel %vm273_vm5, %v947_v53, %v270_v60  ;;  %vm287_vm7 = vweird.f32 %v949_v61  ;;  %v1230_v43 = vpop.eup %950 }
 0x29a   :  { %v279_v1 = vsel %vm276_vm6, %v278_v62, %v274_v0  ;;  %vm288_vm9 = vmor %vm286_vm8, %vm287_vm7  ;;  %v176_v47 = vsel %vm160_vm2, %v1230_v43, 0.0 }
 0x29b   :  { %v283_v2 = vsub.f32 1.0, %v282_v63  ;;  %v1190_v3 = vmul.f32 %v943_v38, %v279_v1 }
 0x29d   :  { %v284_v8 = vmul.f32 %v949_v61, %v283_v2  ;;  %885 = vmatmul.msk.f32.vlgmr.msrb.gmra.mxu0 %vm160_vm2, %v1190_v3 }
 0x29f   :  { %v285_v10 = vadd.f32 %v949_v61, %v284_v8 }
 0x2a1   :  { %v367_v12 = vpop.permute.xlu1 %366  ;;  %v289_v13 = vsel %vm288_vm9, %v949_v61, %v285_v10 }
 0x2a2   :  { %891 = vmatmul.msk.f32.vlgmr.msrb.gmra.mxu2 %vm126_vm1, %v367_v12  ;;  %v294_v14 = vsel %vm291_vm10, %v293_v11, %v289_v13 }
 0x2a3   :  { %v1195_v15 = vmul.f32 %v945_v42, %v294_v14 }
 0x2a4   :  { %v369_v16 = vpop.permute.xlu0 %368 }
 0x2a5   :  { %886 = vmatmul.msk.f32.gmra.mxu0 %vm160_vm2, %v1195_v15 }
 0x2a9   :  { %v487_v18 = vpop.permute.xlu1 %486 }
 0x2aa   :  { %892 = vmatmul.msk.f32.gmra.mxu2 %vm126_vm1, %v369_v16 }
 0x2ad   :  { %897 = vmatmul.msk.f32.vlgmr.msra.gmra.mxu0 %vm126_vm1, %v485_v17 }
 0x2b5   :  { %898 = vmatmul.msk.f32.gmra.mxu0 %vm126_vm1, %v487_v18 }
 0x2cf   :  { %v163_v30 = vpop.xlane.xlu0 %162 }
 0x2d0   :  { %v167_v34 = vsub.f32 %v1186_v50, %v163_v30 }
 0x2d2   :  { %v169_v38 = vmul.f32 1.442695, %v167_v34 }
 0x2d4   :  { %952 = vpow2.f32 %v169_v38 }
 0x2da   :  { %v1233_v46 = vpop.eup %952 }
 0x2db   :  { %v173_v48 = vsel %vm160_vm2, %v1233_v46, 0.0 }
 0x31a   :  { %v1208_v22 = vpop.f32.mrf.mxu0 }
 0x322   :  { %v1218_v27 = vpop.f32.mrf.mxu0 }
 0x325   :  { %v399_v32 = vpop.f32.mrf.mxu2 }
 0x326   :  { %v400_v33 = vadd.f32 %v399_v32, %v1153_v20 }
 0x328   :  { %v405_v36 = vsel %vm160_vm2, %v400_v33, -inf }
 0x329   :  { %406 = vmax.xlane.f32.xlu1 %v405_v36 }
 0x32a   :  { %v517_v37 = vpop.f32.mrf.mxu0 }
 0x32b   :  { %v518_v39 = vadd.f32 %v517_v37, %v1153_v20 }
 0x32d   :  { %v402_v40 = vpop.f32.mrf.mxu2  ;;  %v523_v31 = vsel %vm160_vm2, %v518_v39, -inf }
 0x32e   :  { %v403_v41 = vadd.f32 %v402_v40, %v1160_v24  ;;  %524 = vmax.xlane.f32.xlu2 %v523_v31 }
 0x330   :  { %v408_v42 = vsel %vm160_vm2, %v403_v41, -inf }
 0x331   :  { %409 = vmax.xlane.f32.xlu0 %v408_v42 }
 0x332   :  { %v520_v44 = vpop.f32.mrf.mxu0 }
 0x333   :  { %v521_v45 = vadd.f32 %v520_v44, %v1160_v24  ;;  %v112_v24 = vpop.f32.mrf.mxu1 }
 0x334   :  { %v113_v7 = vadd.f32 %v112_v24, %v62_v59 }
 0x335   :  { %v526_v20 = vsel %vm160_vm2, %v521_v45, -inf }
 0x336   :  { %527 = vmax.xlane.f32.xlu1 %v526_v20  ;;  %177 = vadd.xlane.f32.xlu2 %v176_v47 }
 0x339   :  { %174 = vadd.xlane.f32.xlu0 %v173_v48 }
 0x33b   :  { %v115_v63 = vpop.f32.mrf.mxu1 }
 0x33c   :  { %v116_v0 = vadd.f32 %v115_v63, %v62_v59 }
 0x33e   :  { %473 = vmatpush.msrb.mxu3 %v116_v0  ;;  %v930_v12 = vpack.i.bf16 %v113_v7, %v116_v0 }
 0x340   :  { %474 = vmatpush.msrb.mxu3 %v113_v7 }
 0x39c   :  { %v407_v49 = vpop.xlane.xlu1 %406 }
 0x39d   :  { %v411_v50 = vsub.f32 %v400_v33, %v407_v49 }
 0x39f   :  { %v413_v51 = vmul.f32 1.442695, %v411_v50 }
 0x3a1   :  { %954 = vpow2.f32 %v413_v51  ;;  %v525_v52 = vpop.xlane.xlu2 %524 }
 0x3a2   :  { %v529_v53 = vsub.f32 %v518_v39, %v525_v52 }
 0x3a4   :  { %v531_v54 = vmul.f32 1.442695, %v529_v53  ;;  %v410_v55 = vpop.xlane.xlu0 %409 }
 0x3a5   :  { %v412_v56 = vsub.f32 %v403_v41, %v410_v55 }
 0x3a6   :  { %956 = vpow2.f32 %v531_v54 }
 0x3a7   :  { %v1240_v57 = vpop.eup %954  ;;  %v415_v58 = vmul.f32 1.442695, %v412_v56 }
 0x3a8   :  { %v417_v60 = vsel %vm160_vm2, %v1240_v57, 0.0 }
 0x3a9   :  { %958 = vpow2.f32 %v415_v58  ;;  %418 = vadd.xlane.f32.xlu1 %v417_v60  ;;  %v528_v61 = vpop.xlane.xlu1 %527  ;;  %v1259_v16 = vpop.xlane.xlu2 %177 }
 0x3aa   :  { %v530_v62 = vsub.f32 %v521_v45, %v528_v61  ;;  %vm199_vm10 = vweird.f32 %v1259_v16 }
 0x3ac   :  { %v1245_v1 = vpop.eup %956  ;;  %v533_v2 = vmul.f32 1.442695, %v530_v62  ;;  %v175_v13 = vpop.xlane.xlu0 %174 }
 0x3ad   :  { %v535_v8 = vsel %vm160_vm2, %v1245_v1, 0.0  ;;  %vm184_vm1 = vweird.f32 %v175_v13  ;;  %v190_v48 = vand.u32 2147483648, %v175_v13  ;;  %v188_v50 = vand.u32 2147483647, %v175_v13 }
 0x3ae   :  { %960 = vpow2.f32 %v533_v2  ;;  %536 = vadd.xlane.f32.xlu2 %v535_v8 }
 0x3af   :  { %v1249_v9 = vpop.eup %958  ;;  %962 = vrcp.f32 %v175_v13  ;;  %vm189_vm7 = vcmp.eq.f32.partialorder %v188_v50, 8.507059e+37 }
 0x3b0   :  { %v420_v6 = vsel %vm160_vm2, %v1249_v9, 0.0 }
 0x3b1   :  { %421 = vadd.xlane.f32.xlu0 %v420_v6 }
 0x3b4   :  { %v1253_v10 = vpop.eup %960 }
 0x3b5   :  { %v538_v11 = vsel %vm160_vm2, %v1253_v10, 0.0  ;;  %v963_v17 = vpop.eup %962 }
 0x3b6   :  { %v180_v18 = vmul.f32 %v963_v17, %v175_v13  ;;  %vm185_vm15 = vweird.f32 %v963_v17 }
 0x3b7   :  { %vm1279_vm4 = vmor %vm184_vm1, %vm185_vm15 }
 0x3b9   :  { %539 = vadd.xlane.f32.xlu0 %v538_v11  ;;  %v205_v11 = vand.u32 2147483648, %v1259_v16 }
 0x3c2   :  { %926 = vrot.lane.b32.xlu1 %v1164_v28, %s1018_s2  ;;  %v181_v28 = vsub.f32 1.0, %v180_v18  ;;  %s1023_s2 = smov 128  }
 0x3c4   :  { %v182_v35 = vmul.f32 %v963_v17, %v181_v28 }
 0x3c6   :  { %931 = vrot.lane.b32.xlu2 %v930_v12, %s1010_s27  ;;  %v183_v42 = vadd.f32 %v963_v17, %v182_v35  ;;  %s1024_s27 = smov 8  }
 0x3c8   :  { %v187_v56 = vsel %vm1279_vm4, %v963_v17, %v183_v42 }
 0x41c   :  { %v419_v14 = vpop.xlane.xlu1 %418 }
 0x41d   :  { %964 = vrcp.f32 %v419_v14  ;;  %v434_v30 = vand.u32 2147483648, %v419_v14  ;;  %v432_v33 = vand.u32 2147483647, %v419_v14  ;;  %vm428_vm12 = vweird.f32 %v419_v14 }
 0x41e   :  { %966 = vrcp.f32 %v1259_v16 }
 0x41f   :  { %v435_v38 = vor.u32 1.1754944e-38, %v434_v30  ;;  %vm433_vm14 = vcmp.eq.f32.partialorder %v432_v33, 8.507059e+37 }
 0x421   :  { %v1264_v29 = vpop.xlane.xlu2 %536 }
 0x422   :  { %v550_v30 = vand.u32 2147483647, %v1264_v29 }
 0x423   :  { %v965_v19 = vpop.eup %964 }
 0x424   :  { %v424_v21 = vmul.f32 %v965_v19, %v419_v14  ;;  %v422_v23 = vpop.xlane.xlu0 %421  ;;  %v1262_v25 = vpop.eup %966  ;;  %vm429_vm11 = vweird.f32 %v965_v19  ;;  %vm551_vm1 = vcmp.eq.f32.partialorder %v550_v30, 8.507059e+37 }
 0x425   :  { %968 = vrcp.f32 %v422_v23  ;;  %v195_v34 = vmul.f32 %v1262_v25, %v1259_v16  ;;  %vm430_vm13 = vmor %vm428_vm12, %vm429_vm11  ;;  %v449_v49 = vand.u32 2147483648, %v422_v23  ;;  %v447_v52 = vand.u32 2147483647, %v422_v23 }
 0x426   :  { %v425_v26 = vsub.f32 1.0, %v424_v21  ;;  %970 = vrcp.f32 %v1264_v29  ;;  %vm443_vm5 = vweird.f32 %v422_v23  ;;  %vm200_vm9 = vweird.f32 %v1262_v25 }
 0x427   :  { %v196_v31 = vsub.f32 1.0, %v195_v34  ;;  %v450_v58 = vor.u32 1.1754944e-38, %v449_v49  ;;  %vm448_vm8 = vcmp.eq.f32.partialorder %v447_v52, 8.507059e+37  ;;  %vm201_vm11 = vmor %vm199_vm10, %vm200_vm9 }
 0x428   :  { %v426_v32 = vmul.f32 %v965_v19, %v425_v26  ;;  %v552_v26 = vand.u32 2147483648, %v1264_v29 }
 0x429   :  { %v197_v53 = vmul.f32 %v1262_v25, %v196_v31  ;;  %v932_v61 = vpop.permute.xlu2 %931 }
 0x42a   :  { %v427_v36 = vadd.f32 %v965_v19, %v426_v32  ;;  %v933_v13 = vunpack.i.l.bf16 %v932_v61  ;;  %v934_v17 = vunpack.i.h.bf16 %v932_v61  ;;  %v553_v34 = vor.u32 1.1754944e-38, %v552_v26 }
 0x42b   :  { %v969_v37 = vpop.eup %968  ;;  %v198_v8 = vadd.f32 %v1262_v25, %v197_v53 }
 0x42c   :  { %v439_v39 = vmul.f32 %v969_v37, %v422_v23  ;;  %v431_v40 = vsel %vm430_vm13, %v965_v19, %v427_v36  ;;  %v1269_v45 = vpop.xlane.xlu0 %539  ;;  %v1274_v47 = vpop.eup %970  ;;  %vm444_vm3 = vweird.f32 %v969_v37  ;;  %v206_v23 = vor.u32 1.1754944e-38, %v205_v11 }
 0x42d   :  { %v436_v41 = vsel %vm433_vm14, %v435_v38, %v431_v40  ;;  %972 = vrcp.f32 %v1269_v45  ;;  %v542_v54 = vmul.f32 %v1274_v47, %v1264_v29  ;;  %vm445_vm6 = vmor %vm443_vm5, %vm444_vm3  ;;  %v202_v21 = vsel %vm201_vm11, %v1262_v25, %v198_v8 }
 0x42e   :  { %v440_v44 = vsub.f32 1.0, %v439_v39  ;;  %v1272_v20 = vmul.f32 %v1240_v57, %v436_v41  ;;  %v191_v57 = vor.u32 1.1754944e-38, %v190_v48  ;;  %vm547_vm13 = vweird.f32 %v1274_v47 }
 0x42f   :  { %v543_v2 = vsub.f32 1.0, %v542_v54  ;;  %vm546_vm14 = vweird.f32 %v1264_v29  ;;  %vm561_vm4 = vweird.f32 %v1269_v45 }
 0x430   :  { %v441_v51 = vmul.f32 %v969_v37, %v440_v44  ;;  %893 = vmatmul.msk.f32.vlgmr.msrb.gmra.mxu3 %vm160_vm2, %v1272_v20  ;;  %v192_v0 = vsel %vm189_vm7, %v191_v57, %v187_v56  ;;  %vm548_vm15 = vmor %vm546_vm14, %vm547_vm13  ;;  %vm635_vm14 = vcmask 523264  }
 0x431   :  { %v1298_v14 = vmul.f32 %v1233_v46, %v192_v0  ;;  %v544_v18 = vmul.f32 %v1274_v47, %v543_v2 }
 0x432   :  { %v442_v55 = vadd.f32 %v969_v37, %v441_v51 }
 0x433   :  { %v973_v6 = vpop.eup %972  ;;  %v545_v28 = vadd.f32 %v1274_v47, %v544_v18  ;;  %v711_v18 = vld [vmem:[%s1459_s7 + $0x10] sm:$0xff] }
 0x434   :  { %v927_v59 = vpop.permute.xlu1 %926  ;;  %v446_v60 = vsel %vm445_vm6, %v969_v37, %v442_v55  ;;  %v557_v19 = vmul.f32 %v973_v6, %v1269_v45  ;;  %vm562_vm3 = vweird.f32 %v973_v6  ;;  %v567_v37 = vand.u32 2147483648, %v1269_v45 }
 0x435   :  { %v928_v62 = vunpack.i.l.bf16 %v927_v59  ;;  %v451_v63 = vsel %vm448_vm8, %v450_v58, %v446_v60  ;;  %v929_v12 = vunpack.i.h.bf16 %v927_v59  ;;  %v549_v25 = vsel %vm548_vm15, %v1274_v47, %v545_v28  ;;  %vm563_vm5 = vmor %vm561_vm4, %vm562_vm3  ;;  %v754_v28 = vld [vmem:[%s1461_s9 + $0x30] sm:$0xff] }
 0x436   :  { %v1289_v7 = vmul.f32 %v1249_v9, %v451_v63  ;;  %v203_v9 = vand.u32 2147483647, %v1259_v16  ;;  %v558_v16 = vsub.f32 1.0, %v557_v19  ;;  %v554_v35 = vsel %vm551_vm1, %v553_v34, %v549_v25  ;;  %v710_v19 = vld [vmem:[%s1459_s7 + $0x8] sm:$0xff]  ;;  %v752_v25 = vld [vmem:[%s1461_s9 + $0x20] sm:$0xff] }
 0x437   :  { %357 = vmatpush.msrb.mxu1 %v928_v62  ;;  %v1320_v29 = vmul.f32 %v1245_v1, %v554_v35  ;;  %v568_v39 = vor.u32 1.1754944e-38, %v567_v37  ;;  %v751_v35 = vld [vmem:[%s1461_s9 + $0x18] sm:$0xff]  ;;  %vm632_vm15 = vcmask 392192  }
 0x438   :  { %894 = vmatmul.msk.f32.gmra.mxu3 %vm160_vm2, %v1289_v7  ;;  %vm204_vm12 = vcmp.eq.f32.partialorder %v203_v9, 8.507059e+37  ;;  %v559_v33 = vmul.f32 %v973_v6, %v558_v16  ;;  %v753_v16 = vld [vmem:[%s1461_s9 + $0x28] sm:$0xff] }
 0x439   :  { %358 = vmatpush.msrb.mxu1 %v929_v12  ;;  %v207_v46 = vsel %vm204_vm12, %v206_v23, %v202_v21 }
 0x43a   :  { %887 = vmatmul.msk.f32.vlgmr.msrb.gmra.mxu1 %vm160_vm2, %v1298_v14  ;;  %v1312_v32 = vmul.f32 %v1230_v43, %v207_v46  ;;  %v560_v36 = vadd.f32 %v973_v6, %v559_v33  ;;  %v565_v43 = vand.u32 2147483647, %v1269_v45  ;;  %v935_v45 = vld [vmem:[%s1456_s4] ss:$0 sm:$0xff]  ;;  %s1020_s4 = smov 16   ;;  %v755_v46 = vld [vmem:[%s1461_s9 + $0x38] sm:$0xff] }
 0x43b   :  { %599 = vmatpush.msra.mxu1 %v933_v13  ;;  %774 = vmatpush.msra.mxu3 %v755_v46 }
 0x43c   :  { %v564_v38 = vsel %vm563_vm5, %v973_v6, %v560_v36  ;;  %vm566_vm6 = vcmp.eq.f32.partialorder %v565_v43, 8.507059e+37 }
 0x43d   :  { %600 = vmatpush.msra.mxu1 %v934_v17  ;;  %v569_v40 = vsel %vm566_vm6, %v568_v39, %v564_v38  ;;  %v712_v17 = vld [vmem:[%s1459_s7 + $0x18] sm:$0xff]  ;;  %775 = vmatpush.msra.mxu3 %v754_v28 }
 0x43e   :  { %v570_v31 = vmul.f32 %v1253_v10, %v569_v40  ;;  %735 = vmatpush.msra.mxu2 %v712_v17 }
 0x43f   :  { %776 = vmatpush.msra.mxu3 %v753_v16 }
 0x440   :  { %736 = vmatpush.msra.mxu2 %v711_v18 }
 0x441   :  { %777 = vmatpush.msra.mxu3 %v752_v25 }
 0x442   :  { %888 = vmatmul.msk.f32.gmra.mxu1 %vm160_vm2, %v1312_v32  ;;  %737 = vmatpush.msra.mxu2 %v710_v19 }
 0x443   :  { %778 = vmatpush.msra.mxu3 %v751_v35 }
 0x44a   :  { %899 = vmatmul.msk.f32.vlgmr.msra.gmra.mxu1 %vm160_vm2, %v1320_v29 }
 0x452   :  { %900 = vmatmul.msk.f32.gmra.mxu1 %vm160_vm2, %v570_v31 }
 0x4b3   :  { %v476_v1 = vpop.f32.mrf.mxu3 }
 0x4b7   :  { %v360_v41 = vpop.f32.mrf.mxu1 }
 0x4b8   :  { %v361_v44 = vadd.f32 %v360_v41, %v1208_v22  ;;  %v936_v41 = vld [vmem:[%s1457_s5] ss:$0 sm:$0xff] }
 0x4ba   :  { %v482_v47 = vadd.f32 %v476_v1, %v361_v44 }
 0x4bb   :  { %v479_v10 = vpop.f32.mrf.mxu3 }
 0x4bf   :  { %v363_v42 = vpop.f32.mrf.mxu1 }
 0x4c0   :  { %v364_v50 = vadd.f32 %v363_v42, %v1218_v27  ;;  %v1019_v27 = vmov 32.0  }
 0x4c1   :  { %974 = vrcp.f32 %v1019_v27  ;;  %v938_v27 = vld [vmem:[%s1460_s8] ss:$0 sm:$0xff] }
 0x4c2   :  { %v483_v24 = vadd.f32 %v479_v10, %v364_v50 }
 0x4c7   :  { %v602_v48 = vpop.f32.mrf.mxu1 }
 0x4c8   :  { %v608_v49 = vadd.f32 %v602_v48, %v482_v47  ;;  %v937_v47 = vld [vmem:[%s1458_s6] ss:$0 sm:$0xff] }
 0x4ca   :  { %v642_v51 = vadd.f32 %v935_v45, %v608_v49 }
 0x4cc   :  { %v1333_v52 = vadd.f32 %v642_v51, %v1115_v4  ;;  %v975_v4 = vpop.eup %974 }
 0x4cd   :  { %v655_v58 = vmul.f32 32.0, %v975_v4  ;;  %vm659_vm7 = vweird.f32 %v975_v4 }
 0x4ce   :  { %v648_v53 = vsel %vm65_vm0, %v1333_v52, 0.0 }
 0x4cf   :  { %649 = vadd.xlane.f32.xlu0 %v648_v53  ;;  %v605_v22 = vpop.f32.mrf.mxu1  ;;  %v656_v59 = vsub.f32 1.0, %v655_v58 }
 0x4d0   :  { %v609_v54 = vadd.f32 %v605_v22, %v483_v24 }
 0x4d1   :  { %v657_v60 = vmul.f32 %v975_v4, %v656_v59 }
 0x4d2   :  { %v643_v55 = vadd.f32 %v935_v45, %v609_v54  ;;  %v750_v54 = vld [vmem:[%s1461_s9 + $0x10] sm:$0xff] }
 0x4d3   :  { %v658_v61 = vadd.f32 %v975_v4, %v657_v60  ;;  %779 = vmatpush.msra.mxu3 %v750_v54 }
 0x4d4   :  { %v1338_v56 = vadd.f32 %v643_v55, %v1122_v5  ;;  %v749_v55 = vld [vmem:[%s1461_s9 + $0x8] sm:$0xff] }
 0x4d5   :  { %v1342_v62 = vsel %vm659_vm7, %v975_v4, %v658_v61  ;;  %780 = vmatpush.msra.mxu3 %v749_v55 }
 0x4d6   :  { %v651_v57 = vsel %vm65_vm0, %v1338_v56, 0.0 }
 0x4d7   :  { %652 = vadd.xlane.f32.xlu0 %v651_v57  ;;  %v748_v57 = vld [vmem:[%s1461_s9] sm:$0xff] }
 0x4d8   :  { %781 = vmatpush.msra.mxu3 %v748_v57 }
 0x542   :  { %v650_v63 = vpop.xlane.xlu0 %649 }
 0x543   :  { %v661_v0 = vmul.f32 %v1342_v62, %v650_v63 }
 0x545   :  { %v663_v5 = vsub.f32 %v1333_v52, %v661_v0  ;;  %v939_v0 = vld [vmem:[%s1462_s10] ss:$0 sm:$0xff] }
 0x547   :  { %v665_v2 = vmul.f32 %v663_v5, %v663_v5 }
 0x549   :  { %v667_v8 = vsel %vm65_vm0, %v665_v2, 0.0 }
 0x54a   :  { %668 = vadd.xlane.f32.xlu1 %v667_v8  ;;  %v653_v6 = vpop.xlane.xlu0 %652 }
 0x54b   :  { %v662_v11 = vmul.f32 %v1342_v62, %v653_v6 }
 0x54d   :  { %v664_v12 = vsub.f32 %v1338_v56, %v662_v11 }
 0x54f   :  { %v666_v13 = vmul.f32 %v664_v12, %v664_v12 }
 0x551   :  { %v670_v9 = vsel %vm65_vm0, %v666_v13, 0.0 }
 0x552   :  { %671 = vadd.xlane.f32.xlu0 %v670_v9 }
 0x563   :  { %612 = vrot.lane.b32.xlu1 %v1195_v15, %s1020_s4 }
 0x566   :  { %610 = vrot.lane.b32.xlu0 %v1190_v3, %s1020_s4  ;;  %v709_v3 = vld [vmem:[%s1459_s7] sm:$0xff] }
 0x567   :  { %738 = vmatpush.msra.mxu2 %v709_v3 }
 0x56b   :  { %624 = vrot.lane.b32.xlu1 %v570_v31, %s1021_s3 }
 0x5bd   :  { %v669_v15 = vpop.xlane.xlu1 %668 }
 0x5be   :  { %v673_v21 = vmul.f32 %v669_v15, %v1342_v62 }
 0x5c0   :  { %v675_v23 = vadd.f32 1e-06, %v673_v21 }
 0x5c2   :  { %976 = vrsqrt.f32 %v675_v23  ;;  %vm683_vm9 = vweird.f32 %v675_v23 }
 0x5c5   :  { %v672_v26 = vpop.xlane.xlu0 %671 }
 0x5c6   :  { %v674_v30 = vmul.f32 %v672_v26, %v1342_v62 }
 0x5c8   :  { %v977_v33 = vpop.eup %976  ;;  %v676_v34 = vadd.f32 1e-06, %v674_v30 }
 0x5c9   :  { %v678_v36 = vmul.f32 %v977_v33, %v675_v23  ;;  %vm684_vm8 = vweird.f32 %v977_v33 }
 0x5ca   :  { %978 = vrsqrt.f32 %v676_v34  ;;  %vm685_vm10 = vmor %vm683_vm9, %vm684_vm8  ;;  %vm693_vm12 = vweird.f32 %v676_v34 }
 0x5cb   :  { %v679_v37 = vmul.f32 %v977_v33, %v678_v36 }
 0x5cd   :  { %v680_v43 = vmul.f32 0.5, %v679_v37 }
 0x5cf   :  { %v681_v38 = vsub.f32 1.5, %v680_v43 }
 0x5d0   :  { %v979_v39 = vpop.eup %978 }
 0x5d1   :  { %v682_v40 = vmul.f32 %v977_v33, %v681_v38  ;;  %v688_v31 = vmul.f32 %v979_v39, %v676_v34  ;;  %vm694_vm11 = vweird.f32 %v979_v39 }
 0x5d2   :  { %vm695_vm13 = vmor %vm693_vm12, %vm694_vm11 }
 0x5d3   :  { %v686_v42 = vsel %vm685_vm10, %v977_v33, %v682_v40  ;;  %v689_v44 = vmul.f32 %v979_v39, %v688_v31 }
 0x5d4   :  { %v697_v1 = vmul.f32 %v686_v42, %v663_v5 }
 0x5d5   :  { %v690_v45 = vmul.f32 0.5, %v689_v44 }
 0x5d6   :  { %v702_v48 = vmul.f32 %v936_v41, %v697_v1 }
 0x5d7   :  { %v691_v49 = vsub.f32 1.5, %v690_v45 }
 0x5d8   :  { %v707_v50 = vadd.f32 %v937_v47, %v702_v48  ;;  %v611_v19 = vpop.permute.xlu0 %610 }
 0x5d9   :  { %v692_v51 = vmul.f32 %v979_v39, %v691_v49  ;;  %v941_v49 = vld [vmem:[%s1464_s12] ss:$0 sm:$0xff] }
 0x5da   :  { %901 = vmatmul.msk.f32.vlgmr.msra.gmra.mxu2 %vm65_vm0, %v707_v50 }
 0x5db   :  { %v696_v10 = vsel %vm695_vm13, %v979_v39, %v692_v51 }
 0x5dc   :  { %v698_v53 = vmul.f32 %v696_v10, %v664_v12 }
 0x5de   :  { %v703_v24 = vmul.f32 %v936_v41, %v698_v53  ;;  %v628_v53 = vsel %vm160_vm2, %v1298_v14, %v611_v19 }
 0x5e0   :  { %v708_v22 = vadd.f32 %v937_v47, %v703_v24  ;;  %v940_v47 = vld [vmem:[%s1463_s11] ss:$0 sm:$0xff] }
 0x5e2   :  { %902 = vmatmul.msk.f32.gmra.mxu2 %vm65_vm0, %v708_v22 }
 0x65d   :  { %v740_v4 = vpop.f32.mrf.mxu2 }
 0x65e   :  { %v741_v58 = vadd.f32 %v938_v27, %v740_v4 }
 0x660   :  { %v746_v59 = vmax.f32 %v741_v58, 0.0 }
 0x662   :  { %903 = vmatmul.msk.f32.vlgmr.msra.gmra.mxu3 %vm635_vm14, %v746_v59 }
 0x665   :  { %v743_v60 = vpop.f32.mrf.mxu2 }
 0x666   :  { %v744_v61 = vadd.f32 %v938_v27, %v743_v60 }
 0x668   :  { %v747_v63 = vmax.f32 %v744_v61, 0.0 }
 0x66a   :  { %904 = vmatmul.msk.f32.gmra.mxu3 %vm635_vm14, %v747_v63 }
 0x6e5   :  { %v783_v5 = vpop.f32.mrf.mxu3 }
 0x6e6   :  { %v784_v2 = vadd.f32 %v939_v0, %v783_v5 }
 0x6e8   :  { %v789_v8 = vadd.f32 %v784_v2, %v1333_v52 }
 0x6ea   :  { %v791_v6 = vadd.f32 %v789_v8, %v1333_v52 }
 0x6ec   :  { %v795_v11 = vsel %vm65_vm0, %v791_v6, 0.0 }
 0x6ed   :  { %796 = vadd.xlane.f32.xlu2 %v795_v11  ;;  %v786_v12 = vpop.f32.mrf.mxu3 }
 0x6ee   :  { %v787_v13 = vadd.f32 %v939_v0, %v786_v12 }
 0x6f0   :  { %v790_v9 = vadd.f32 %v787_v13, %v1338_v56 }
 0x6f2   :  { %v792_v17 = vadd.f32 %v790_v9, %v1338_v56 }
 0x6f4   :  { %v798_v18 = vsel %vm65_vm0, %v792_v17, 0.0 }
 0x6f5   :  { %799 = vadd.xlane.f32.xlu0 %v798_v18 }
 0x705   :  { %616 = vrot.lane.b32.xlu2 %v1272_v20, %s1014_s17  ;;  %v613_v20 = vpop.permute.xlu1 %612 }
 0x709   :  { %618 = vrot.lane.b32.xlu0 %v1289_v7, %s1014_s17  ;;  %v629_v7 = vsel %vm160_vm2, %v1312_v32, %v613_v20 }
 0x70d   :  { %v625_v25 = vpop.permute.xlu1 %624 }
 0x760   :  { %v797_v52 = vpop.xlane.xlu2 %796 }
 0x761   :  { %v801_v3 = vmul.f32 %v797_v52, %v1342_v62 }
 0x763   :  { %v803_v15 = vsub.f32 %v791_v6, %v801_v3 }
 0x765   :  { %v805_v21 = vmul.f32 %v803_v15, %v803_v15 }
 0x767   :  { %v807_v23 = vsel %vm65_vm0, %v805_v21, 0.0 }
 0x768   :  { %808 = vadd.xlane.f32.xlu0 %v807_v23  ;;  %v800_v46 = vpop.xlane.xlu0 %799  ;;  %v617_v50 = vpop.permute.xlu2 %616 }
 0x769   :  { %v802_v56 = vmul.f32 %v800_v46, %v1342_v62  ;;  %v630_v22 = vsel %vm65_vm0, %v628_v53, %v617_v50 }
 0x76b   :  { %v804_v28 = vsub.f32 %v792_v17, %v802_v56 }
 0x76d   :  { %v806_v16 = vmul.f32 %v804_v28, %v804_v28 }
 0x76f   :  { %v810_v26 = vsel %vm65_vm0, %v806_v16, 0.0 }
 0x770   :  { %811 = vadd.xlane.f32.xlu0 %v810_v26 }
 0x77b   :  { %v619_v30 = vpop.permute.xlu0 %618 }
 0x77c   :  { %v631_v33 = vsel %vm65_vm0, %v629_v7, %v619_v30 }
 0x77d   :  { %v634_v34 = vsel %vm632_vm15, %v631_v33, %v625_v25 }
 0x77e   :  { %637 = vst.msk [vmem:[%s1466_s14 + $0x8] sm:$0xff] %vm635_vm14, %v634_v34 }
 0x784   :  { %622 = vrot.lane.b32.xlu0 %v1320_v29, %s1021_s3 }
 0x7db   :  { %v809_v35 = vpop.xlane.xlu0 %808 }
 0x7dc   :  { %v813_v36 = vmul.f32 %v809_v35, %v1342_v62 }
 0x7de   :  { %v815_v37 = vadd.f32 1e-06, %v813_v36 }
 0x7e0   :  { %980 = vrsqrt.f32 %v815_v37  ;;  %vm823_vm3 = vweird.f32 %v815_v37 }
 0x7e3   :  { %v812_v32 = vpop.xlane.xlu0 %811 }
 0x7e4   :  { %v814_v43 = vmul.f32 %v812_v32, %v1342_v62 }
 0x7e6   :  { %v981_v38 = vpop.eup %980  ;;  %v816_v39 = vadd.f32 1e-06, %v814_v43 }
 0x7e7   :  { %v818_v40 = vmul.f32 %v981_v38, %v815_v37  ;;  %vm824_vm1 = vweird.f32 %v981_v38 }
 0x7e8   :  { %982 = vrsqrt.f32 %v816_v39  ;;  %vm825_vm4 = vmor %vm823_vm3, %vm824_vm1  ;;  %vm833_vm6 = vweird.f32 %v816_v39 }
 0x7e9   :  { %v819_v31 = vmul.f32 %v981_v38, %v818_v40 }
 0x7eb   :  { %v820_v41 = vmul.f32 0.5, %v819_v31 }
 0x7ed   :  { %v821_v42 = vsub.f32 1.5, %v820_v41 }
 0x7ee   :  { %v983_v44 = vpop.eup %982 }
 0x7ef   :  { %v822_v1 = vmul.f32 %v981_v38, %v821_v42  ;;  %v828_v29 = vmul.f32 %v983_v44, %v816_v39  ;;  %vm834_vm5 = vweird.f32 %v983_v44 }
 0x7f0   :  { %vm835_vm7 = vmor %vm833_vm6, %vm834_vm5 }
 0x7f1   :  { %v826_v45 = vsel %vm825_vm4, %v981_v38, %v822_v1  ;;  %v829_v48 = vmul.f32 %v983_v44, %v828_v29 }
 0x7f2   :  { %v837_v62 = vmul.f32 %v826_v45, %v803_v15 }
 0x7f3   :  { %v830_v51 = vmul.f32 0.5, %v829_v48 }
 0x7f4   :  { %v842_v10 = vmul.f32 %v940_v47, %v837_v62 }
 0x7f5   :  { %v831_v24 = vsub.f32 1.5, %v830_v51 }
 0x7f6   :  { %v623_v54 = vpop.permute.xlu0 %622  ;;  %v847_v55 = vadd.f32 %v941_v49, %v842_v10 }
 0x7f7   :  { %v832_v57 = vmul.f32 %v983_v44, %v831_v24  ;;  %v633_v27 = vsel %vm632_vm15, %v630_v22, %v623_v54 }
 0x7f8   :  { %636 = vst.msk [vmem:[%s1466_s14] sm:$0xff] %vm635_vm14, %v633_v27 }
 0x7f9   :  { %v836_v4 = vsel %vm835_vm7, %v983_v44, %v832_v57  ;;  %849 = vst.msk [vmem:[#allocation2] sm:$0xff] %vm65_vm0, %v847_v55 }
 0x7fa   :  { %v838_v14 = vmul.f32 %v836_v4, %v804_v28 }
 0x7fc   :  { %v843_v58 = vmul.f32 %v940_v47, %v838_v14 }
 0x7fe   :  { %v848_v59 = vadd.f32 %v941_v49, %v843_v58 }
 0x800   :  { %850 = vst.msk [vmem:[#allocation2 + $0x8] sm:$0xff] %vm65_vm0, %v848_v59 }
 0x801   :  { %863 = dma.vmem_to_hbm [thread:$0]  %s856_s25, 256, %s858_s28, [#allocation3], %s1023_s2, %s1023_s2, %s1024_s27  }
 0x802   :  { %1008 = dma.done.wait [#allocation3], 256  }
 0x803   :  { %1009 = vsyncadd [#allocation3], 4294967040 }
 0x804   :  { %872 = vsyncpa [#allocation3], 1 }

</bundles_post_ra>
